<compile_context>
chip_gen: v7x
topology: tpu7x:2x2x1
jax: 0.10.0
libtpu: 0.0.40
codegen_flags: <defaults>
</compile_context>

<pallas_src>
import functools

import jax
import jax.numpy as jnp
import numpy as np
from jax import lax
from jax.experimental import pallas as pl
from jax.experimental.pallas import tpu as pltpu

LN_EPS = 1e-5


# ---------------------------------------------------------------------------
# In-kernel math helpers
# ---------------------------------------------------------------------------
def _layer_norm(v):
    """nn.LayerNorm at init (weight=1, bias=0).

    var = E[x^2] - mu^2: the two reductions are independent so the XLU can
    overlap them; the 1/N scale folds into one multiply each.  var is clamped
    at 0 to guard the single-pass form against cancellation when |mu| >> std.
    """
    inv_n = 1.0 / v.shape[-1]
    s1 = jnp.sum(v, axis=-1, keepdims=True)
    s2 = jnp.sum(v * v, axis=-1, keepdims=True)
    mu = s1 * inv_n
    var = jnp.maximum(s2 * inv_n - mu * mu, 0.0)
    return (v - mu) * jax.lax.rsqrt(var + LN_EPS)


def _gru_update(h, hp, xp, hidden_dim, layer_norm, x_pre_normalized):
    """Shared gating math (all operands f32).

    hp = h @ [W_h | U]  -> (B, 3H)
    xp = x @ [W_i | W]  -> (B, 3H)   (x-side LayerNorms may be pre-applied)
    """
    h2 = 2 * hidden_dim
    gates_h, hu = hp[:, :h2], hp[:, h2:]
    gates_x, xw = xp[:, :h2], xp[:, h2:]
    if layer_norm:
        gates_h = _layer_norm(gates_h)       # ln1
        hu = _layer_norm(hu)                 # ln4
        if not x_pre_normalized:
            gates_x = _layer_norm(gates_x)   # ln2
            xw = _layer_norm(xw)             # ln3
    gates = gates_h + gates_x
    # torch.chunk(2, dim=1): first half is z, second half is r
    z = gates[:, :hidden_dim]
    r = gates[:, hidden_dim:]
    hh = jnp.tanh(xw + jax.nn.sigmoid(r) * hu)
    zs = jax.nn.sigmoid(z)
    return (1.0 - zs) * h + zs * hh


# ---------------------------------------------------------------------------
# VMEM sizing (block-accurate, generation-aware)
# ---------------------------------------------------------------------------
def _nbytes(shape, dtype):
    return int(np.prod(shape)) * jnp.dtype(dtype).itemsize


def _vmem_limit_bytes(resident_bytes, streamed_bytes, scratch_bytes=0):
    """Scoped-VMEM request sized from the actual blocks.

    Weights with a constant index_map are single-buffered (x1); streamed
    input/output blocks are double-buffered by the pipeline (x2); scratch x1;
    plus ~2 MiB compiler headroom.  Capped below the physical capacity of the
    current generation (64 MiB on v7x, 128 MiB on v5e/v6e).
    """
    need = resident_bytes + 2 * streamed_bytes + scratch_bytes + (2 << 20)
    try:
        cap = int(pltpu.get_tpu_info().vmem_capacity_bytes)
    except Exception:
        cap = 64 << 20                      # conservative (v7x) floor
    ceiling = max(cap - (8 << 20), cap // 2)
    return int(max(min(need, ceiling), min(16 << 20, ceiling)))


# ---------------------------------------------------------------------------
# Single-step GRU cell kernel (direct translation of the module's forward)
# ---------------------------------------------------------------------------
def gru_cell_kernel(x_ref, h_ref, wiw_ref, whu_ref, out_ref, *,
                    hidden_dim, layer_norm):
    h_f32 = h_ref[...].astype(jnp.float32)
    # Two fused matmuls on the MXU (bf16 operands if the caller stored bf16
    # weights; accumulation always f32).
    xp = jnp.dot(x_ref[...].astype(wiw_ref.dtype), wiw_ref[...],
                 preferred_element_type=jnp.float32)
    hp = jnp.dot(h_ref[...].astype(whu_ref.dtype), whu_ref[...],
                 preferred_element_type=jnp.float32)
    h_new = _gru_update(h_f32, hp, xp, hidden_dim, layer_norm,
                        x_pre_normalized=False)
    out_ref[...] = h_new.astype(out_ref.dtype)


def gru_cell_forward(x, h, Wi_W, Wh_U, *, layer_norm=True, block_b=None):
    """One GRU step.  Wi_W = [W_iz|W_ir|W] (D,3H), Wh_U = [W_hz|W_hr|U] (H,3H)."""
    B, input_dim = x.shape
    hidden_dim = h.shape[1]
    assert Wi_W.shape == (input_dim, 3 * hidden_dim)
    assert Wh_U.shape == (hidden_dim, 3 * hidden_dim)

    if block_b is None:
        # >=2 batch tiles when B is large so the "parallel" axis can shard
        # across the two v7x TensorCores; full batch otherwise.
        block_b = B if B <= 256 else 256
    block_b = min(block_b, B)
    grid = (pl.cdiv(B, block_b),)

    kernel = functools.partial(
        gru_cell_kernel, hidden_dim=hidden_dim, layer_norm=layer_norm)

    resident = _nbytes(Wi_W.shape, Wi_W.dtype) + _nbytes(Wh_U.shape, Wh_U.dtype)
    streamed = (_nbytes((block_b, input_dim), x.dtype)
                + _nbytes((block_b, hidden_dim), h.dtype)
                + _nbytes((block_b, hidden_dim), h.dtype))

    assert h.dtype == h.dtype  # out dtype == h dtype (required for aliasing)
    return pl.pallas_call(
        kernel,
        out_shape=jax.ShapeDtypeStruct((B, hidden_dim), h.dtype),
        grid=grid,
        in_specs=[
            pl.BlockSpec((block_b, input_dim), lambda i: (i, 0)),
            pl.BlockSpec((block_b, hidden_dim), lambda i: (i, 0)),
            # constant index_map -> weights fetched once, stay resident
            pl.BlockSpec((input_dim, 3 * hidden_dim), lambda i: (0, 0)),
            pl.BlockSpec((hidden_dim, 3 * hidden_dim), lambda i: (0, 0)),
        ],
        out_specs=pl.BlockSpec((block_b, hidden_dim), lambda i: (i, 0)),
        # h is updated "in place" when the caller donates it (P8).
        input_output_aliases={1: 0},
        compiler_params=pltpu.CompilerParams(
            dimension_semantics=("parallel",),   # batch tiles -> v7x megacore
            vmem_limit_bytes=_vmem_limit_bytes(resident, streamed),
        ),
    )(x, h, Wi_W, Wh_U)


# ---------------------------------------------------------------------------
# Sequence path: hoisted input projection + weight-resident, time-blocked
# recurrence
# ---------------------------------------------------------------------------
def gru_input_proj_kernel(x_ref, wiw_ref, out_ref, *, hidden_dim, layer_norm):
    xp = jnp.dot(x_ref[...].astype(wiw_ref.dtype), wiw_ref[...],
                 preferred_element_type=jnp.float32)
    if layer_norm:
        h2 = 2 * hidden_dim
        # ln2 over 2H and ln3 over H are timestep-independent: hoist them
        # here.  Store the two halves directly (lane-aligned slices when H is
        # a multiple of 128) -- no concatenate temp.
        out_ref[:, :h2] = _layer_norm(xp[:, :h2]).astype(out_ref.dtype)
        out_ref[:, h2:] = _layer_norm(xp[:, h2:]).astype(out_ref.dtype)
    else:
        out_ref[...] = xp.astype(out_ref.dtype)


def gru_input_projection(x_flat, Wi_W, *, hidden_dim, layer_norm,
                         block_m=512, out_dtype=jnp.bfloat16):
    M, D = x_flat.shape
    block_m = min(block_m, M)
    kernel = functools.partial(
        gru_input_proj_kernel, hidden_dim=hidden_dim, layer_norm=layer_norm)

    resident = _nbytes(Wi_W.shape, Wi_W.dtype)
    streamed = (_nbytes((block_m, D), x_flat.dtype)
                + _nbytes((block_m, 3 * hidden_dim), out_dtype))

    return pl.pallas_call(
        kernel,
        out_shape=jax.ShapeDtypeStruct((M, 3 * hidden_dim), out_dtype),
        grid=(pl.cdiv(M, block_m),),
        in_specs=[
            pl.BlockSpec((block_m, D), lambda i: (i, 0)),
            pl.BlockSpec((D, 3 * hidden_dim), lambda i: (0, 0)),
        ],
        out_specs=pl.BlockSpec((block_m, 3 * hidden_dim), lambda i: (i, 0)),
        compiler_params=pltpu.CompilerParams(
            dimension_semantics=("parallel",),
            vmem_limit_bytes=_vmem_limit_bytes(resident, streamed),
        ),
    )(x_flat, Wi_W)


def gru_recurrence_kernel(xp_ref, h0_ref, whu_ref, out_ref, h_scr, *,
                          hidden_dim, layer_norm, t_blk):
    tb = pl.program_id(1)                   # time-block index (fastest axis)

    @pl.when(tb == 0)
    def _():
        h_scr[...] = h0_ref[...].astype(jnp.float32)

    whu = whu_ref[...]

    def step(j, h):
        hp = jnp.dot(h.astype(whu.dtype), whu,
                     preferred_element_type=jnp.float32)
        h_new = _gru_update(h, hp, xp_ref[j].astype(jnp.float32),
                            hidden_dim, layer_norm, x_pre_normalized=True)
        out_ref[j] = h_new.astype(out_ref.dtype)
        return h_new

    # Time-blocked inner loop: amortizes per-grid-step overhead over t_blk
    # tiny (B,H)x(H,3H) matmuls.  unroll=True keeps it visible to the LLO
    # scheduler.
    h_scr[...] = lax.fori_loop(0, t_blk, step, h_scr[...], unroll=True)


def _pick_t_block(T, max_blk=8):
    """Largest divisor of T that is <= max_blk (keeps every block full)."""
    for tb in range(min(max_blk, T), 0, -1):
        if T % tb == 0:
            return tb
    return 1


def gru_sequence_forward(x_seq, h0, Wi_W, Wh_U, *, layer_norm=True,
                         t_block=8, block_b=None, xp_dtype=jnp.bfloat16):
    """Run the cell over a (T, B, D) sequence.  Returns all hidden states
    (T, B, H).  Recurrent weights stay resident in VMEM across all grid
    steps; the recurrence is time-blocked and batch-tiled (megacore)."""
    T, B, input_dim = x_seq.shape
    hidden_dim = h0.shape[1]

    # Hoist ALL input projections (and their LayerNorms) out of the recurrence
    # as one big (T*B, D) x (D, 3H) matmul; store the result in bf16 to halve
    # the dominant HBM stream of the sequence path.
    xp = gru_input_projection(x_seq.reshape(T * B, input_dim), Wi_W,
                              hidden_dim=hidden_dim, layer_norm=layer_norm,
                              out_dtype=xp_dtype)
    xp = xp.reshape(T, B, 3 * hidden_dim)

    if block_b is None:
        block_b = B if B <= 256 else 256
    block_b = min(block_b, B)
    t_blk = _pick_t_block(T, t_block)
    grid = (pl.cdiv(B, block_b), T // t_blk)

    kernel = functools.partial(
        gru_recurrence_kernel, hidden_dim=hidden_dim, layer_norm=layer_norm,
        t_blk=t_blk)

    resident = _nbytes(Wh_U.shape, Wh_U.dtype)
    streamed = (_nbytes((t_blk, block_b, 3 * hidden_dim), xp.dtype)
                + _nbytes((block_b, hidden_dim), h0.dtype)
                + _nbytes((t_blk, block_b, hidden_dim), h0.dtype))
    scratch = _nbytes((block_b, hidden_dim), jnp.float32)

    # TODO(synk): for very small B with the recurrent matmul still on the
    # critical path, weight-stationary MXU driving (pltpu.matmul_push_rhs once
    # per batch tile + matmul_acc_lhs/matmul_pop per step) would remove the
    # per-step RHS streaming cost.
    return pl.pallas_call(
        kernel,
        out_shape=jax.ShapeDtypeStruct((T, B, hidden_dim), h0.dtype),
        grid=grid,
        in_specs=[
            pl.BlockSpec((t_blk, block_b, 3 * hidden_dim),
                         lambda b, t: (t, b, 0)),
            pl.BlockSpec((block_b, hidden_dim), lambda b, t: (b, 0)),   # h0
            pl.BlockSpec((hidden_dim, 3 * hidden_dim),
                         lambda b, t: (0, 0)),                # weights resident
        ],
        out_specs=pl.BlockSpec((t_blk, block_b, hidden_dim),
                               lambda b, t: (t, b, 0)),
        scratch_shapes=[pltpu.VMEM((block_b, hidden_dim), jnp.float32)],  # h carry
        compiler_params=pltpu.CompilerParams(
            # batch tiles are independent (megacore); time axis is sequential.
            dimension_semantics=("parallel", "arbitrary"),
            vmem_limit_bytes=_vmem_limit_bytes(resident, streamed, scratch),
        ),
    )(xp, h0, Wh_U)


# ---------------------------------------------------------------------------
# Parameter construction (plain JAX)
# ---------------------------------------------------------------------------
def xavier_uniform(key, shape):
    fan_in, fan_out = shape
    bound = float(np.sqrt(6.0 / (fan_in + fan_out)))
    return jax.random.uniform(key, shape, jnp.float32, -bound, bound)


def orthogonal(key, shape):
    a = jax.random.normal(key, shape, jnp.float32)
    q, r = jnp.linalg.qr(a)
    q = q * jnp.sign(jnp.diag(r))[None, :]
    return q[: shape[0], : shape[1]]


def make_params(key, input_dim, hidden_dim, dtype=jnp.float32):
    """Pre-fused layouts: [W_i | W] (D,3H) and [W_h | U] (H,3H) -> 2 matmuls
    per step.  For best MXU throughput store the weights in bf16
    (dtype=jnp.bfloat16); hidden_dim should be a multiple of 128 so the
    z/r/candidate slices are lane-aligned."""
    ks = jax.random.split(key, 6)
    W_iz = xavier_uniform(ks[0], (input_dim, hidden_dim))
    W_ir = xavier_uniform(ks[1], (input_dim, hidden_dim))
    W = xavier_uniform(ks[2], (input_dim, hidden_dim))
    W_hz = orthogonal(ks[3], (hidden_dim, hidden_dim))
    W_hr = orthogonal(ks[4], (hidden_dim, hidden_dim))
    U = orthogonal(ks[5], (hidden_dim, hidden_dim))
    Wi_W = jnp.concatenate([W_iz, W_ir, W], axis=1).astype(dtype)   # [W_i | W]
    Wh_U = jnp.concatenate([W_hz, W_hr, U], axis=1).astype(dtype)   # [W_h | U]
    return Wi_W, Wh_U


# ---------------------------------------------------------------------------
# Pure-JAX reference (mirrors the PyTorch forward exactly)
# ---------------------------------------------------------------------------
def gru_cell_ref(x, h, Wi_W, Wh_U, layer_norm=True):
    x = x.astype(jnp.float32)
    h = h.astype(jnp.float32)
    Wi_W = Wi_W.astype(jnp.float32)
    Wh_U = Wh_U.astype(jnp.float32)
    hd = h.shape[1]
    W_i, W = Wi_W[:, : 2 * hd], Wi_W[:, 2 * hd:]
    W_h, U = Wh_U[:, : 2 * hd], Wh_U[:, 2 * hd:]

    def ln(v):
        mu = jnp.mean(v, axis=-1, keepdims=True)
        var = jnp.mean((v - mu) ** 2, axis=-1, keepdims=True)
        return (v - mu) / jnp.sqrt(var + LN_EPS)

    if layer_norm:
        gates = ln(h @ W_h) + ln(x @ W_i)
    else:
        gates = h @ W_h + x @ W_i
    z, r = gates[:, :hd], gates[:, hd:]
    if layer_norm:
        hh = jnp.tanh(ln(x @ W) + jax.nn.sigmoid(r) * ln(h @ U))
    else:
        hh = jnp.tanh(x @ W + jax.nn.sigmoid(r) * (h @ U))
    zs = jax.nn.sigmoid(z)
    return (1.0 - zs) * h + zs * hh


if __name__ == "__main__":
    input_dim, hidden_dim, batch, seq_len = 64, 128, 8, 16

    key = jax.random.PRNGKey(0)
    kx, kh, kp, ks = jax.random.split(key, 4)
    x = jax.random.normal(kx, (batch, input_dim), jnp.float32)
    h = jax.random.normal(kh, (batch, hidden_dim), jnp.float32)
    x_seq = jax.random.normal(ks, (seq_len, batch, input_dim), jnp.float32)
    Wi_W, Wh_U = make_params(kp, input_dim, hidden_dim, dtype=jnp.float32)

    # ---- single step, f32 (exact-tolerance check) ----------------------------
    ref = gru_cell_ref(x, h, Wi_W, Wh_U, layer_norm=True)
    out = jax.block_until_ready(gru_cell_forward(x, h, Wi_W, Wh_U,
                                                 layer_norm=True))
    np.testing.assert_allclose(np.asarray(out), np.asarray(ref),
                               rtol=1e-5, atol=2e-5)

    # ---- single step, bf16 weights/activations (f32 math inside) -------------
    xb, hb = x.astype(jnp.bfloat16), h.astype(jnp.bfloat16)
    Wi_Wb, Wh_Ub = Wi_W.astype(jnp.bfloat16), Wh_U.astype(jnp.bfloat16)
    ref_b = gru_cell_ref(xb, hb, Wi_Wb, Wh_Ub, layer_norm=True)
    out_b = jax.block_until_ready(gru_cell_forward(xb, hb, Wi_Wb, Wh_Ub,
                                                   layer_norm=True))
    np.testing.assert_allclose(np.asarray(out_b.astype(jnp.float32)),
                               np.asarray(ref_b), rtol=2e-2, atol=2e-2)

    # ---- sequence reference ---------------------------------------------------
    def step(h_c, x_t):
        h_n = gru_cell_ref(x_t, h_c, Wi_W, Wh_U, layer_norm=True)
        return h_n, h_n

    _, hs_ref = jax.lax.scan(step, h, x_seq)

    # Sequence, f32 xp (tight tolerance): time-blocked, weight-resident.
    hs_f32 = jax.block_until_ready(
        gru_sequence_forward(x_seq, h, Wi_W, Wh_U, layer_norm=True,
                             xp_dtype=jnp.float32))
    np.testing.assert_allclose(np.asarray(hs_f32), np.asarray(hs_ref),
                               rtol=1e-4, atol=1e-4)

    # Sequence, default bf16 xp (halved HBM traffic; loosened tolerance).
    hs_bf16 = jax.block_until_ready(
        gru_sequence_forward(x_seq, h, Wi_W, Wh_U, layer_norm=True))
    np.testing.assert_allclose(np.asarray(hs_bf16), np.asarray(hs_ref),
                               rtol=5e-2, atol=5e-2)

    print("KERNEL_OK")
</pallas_src>

<mosaic_0001>
module attributes {stable_mosaic.version = 11 : i64} {
  func.func @gru_cell_kernel(%arg0: i32, %arg1: memref<8x64xf32, #tpu.memory_space<vmem>>, %arg2: memref<8x128xf32, #tpu.memory_space<vmem>>, %arg3: memref<64x384xf32, #tpu.memory_space<vmem>>, %arg4: memref<128x384xf32, #tpu.memory_space<vmem>>, %arg5: memref<8x128xf32, #tpu.memory_space<vmem>>) attributes {dimension_semantics = [#tpu.dimension_semantics<parallel>], iteration_bounds = array<i64: 1>, scalar_prefetch = 0 : i64, scratch_operands = 0 : i64, tpu.core_type = #tpu.core_type<tc>, window_params = [{transform_indices = @transform_0, window_bounds = array<i64: 8, 64>}, {transform_indices = @transform_1, window_bounds = array<i64: 8, 128>}, {pipeline_mode = #tpu.pipeline_mode<synchronous>, transform_indices = @transform_2, window_bounds = array<i64: 64, 384>}, {pipeline_mode = #tpu.pipeline_mode<synchronous>, transform_indices = @transform_3, window_bounds = array<i64: 128, 384>}, {transform_indices = @transform_4, window_bounds = array<i64: 8, 128>}]} {
    %c0 = arith.constant 0 : index
    %c0_0 = arith.constant 0 : index
    %0 = vector.load %arg2[%c0, %c0_0] : memref<8x128xf32, #tpu.memory_space<vmem>>, vector<8x128xf32>
    %c0_1 = arith.constant 0 : index
    %c0_2 = arith.constant 0 : index
    %1 = vector.load %arg1[%c0_1, %c0_2] : memref<8x64xf32, #tpu.memory_space<vmem>>, vector<8x64xf32>
    %c0_3 = arith.constant 0 : index
    %c0_4 = arith.constant 0 : index
    %2 = vector.load %arg3[%c0_3, %c0_4] : memref<64x384xf32, #tpu.memory_space<vmem>>, vector<64x384xf32>
    %cst = arith.constant dense<0.000000e+00> : vector<8x384xf32>
    %3 = tpu.matmul %1, %2, %cst {dimension_numbers = #tpu.dot_dimension_numbers<[1], [0], [0], [1], [0, 0, 1, 1], [], []>} : vector<8x64xf32>, vector<64x384xf32>, vector<8x384xf32> -> vector<8x384xf32>
    %c0_5 = arith.constant 0 : index
    %c0_6 = arith.constant 0 : index
    %4 = vector.load %arg2[%c0_5, %c0_6] : memref<8x128xf32, #tpu.memory_space<vmem>>, vector<8x128xf32>
    %c0_7 = arith.constant 0 : index
    %c0_8 = arith.constant 0 : index
    %5 = vector.load %arg4[%c0_7, %c0_8] : memref<128x384xf32, #tpu.memory_space<vmem>>, vector<128x384xf32>
    %cst_9 = arith.constant dense<0.000000e+00> : vector<8x384xf32>
    %6 = tpu.matmul %4, %5, %cst_9 {dimension_numbers = #tpu.dot_dimension_numbers<[1], [0], [0], [1], [0, 0, 1, 1], [], []>} : vector<8x128xf32>, vector<128x384xf32>, vector<8x384xf32> -> vector<8x384xf32>
    %7 = vector.extract_strided_slice %6 {offsets = [0, 0], sizes = [8, 256], strides = [1, 1]} : vector<8x384xf32> to vector<8x256xf32>
    %8 = vector.extract_strided_slice %6 {offsets = [0, 256], sizes = [8, 128], strides = [1, 1]} : vector<8x384xf32> to vector<8x128xf32>
    %9 = vector.extract_strided_slice %3 {offsets = [0, 0], sizes = [8, 256], strides = [1, 1]} : vector<8x384xf32> to vector<8x256xf32>
    %10 = vector.extract_strided_slice %3 {offsets = [0, 256], sizes = [8, 128], strides = [1, 1]} : vector<8x384xf32> to vector<8x128xf32>
    %cst_10 = arith.constant dense<0.000000e+00> : vector<8xf32>
    %11 = vector.multi_reduction <add>, %7, %cst_10 [1] : vector<8x256xf32> to vector<8xf32>
    %12 = vector.shape_cast %11 : vector<8xf32> to vector<8x1xf32>
    %13 = arith.mulf %7, %7 : vector<8x256xf32>
    %cst_11 = arith.constant dense<0.000000e+00> : vector<8xf32>
    %14 = vector.multi_reduction <add>, %13, %cst_11 [1] : vector<8x256xf32> to vector<8xf32>
    %15 = vector.shape_cast %14 : vector<8xf32> to vector<8x1xf32>
    %cst_12 = arith.constant 3.906250e-03 : f32
    %16 = vector.broadcast %cst_12 : f32 to vector<8x1xf32>
    %17 = arith.mulf %12, %16 : vector<8x1xf32>
    %cst_13 = arith.constant 3.906250e-03 : f32
    %18 = vector.broadcast %cst_13 : f32 to vector<8x1xf32>
    %19 = arith.mulf %15, %18 : vector<8x1xf32>
    %20 = arith.mulf %17, %17 : vector<8x1xf32>
    %21 = arith.subf %19, %20 : vector<8x1xf32>
    %cst_14 = arith.constant 0.000000e+00 : f32
    %22 = vector.broadcast %cst_14 : f32 to vector<8x1xf32>
    %23 = arith.maximumf %21, %22 : vector<8x1xf32>
    %24 = vector.broadcast %17 : vector<8x1xf32> to vector<8x256xf32>
    %25 = arith.subf %7, %24 : vector<8x256xf32>
    %cst_15 = arith.constant 9.99999974E-6 : f32
    %26 = vector.broadcast %cst_15 : f32 to vector<8x1xf32>
    %27 = arith.addf %23, %26 : vector<8x1xf32>
    %28 = math.rsqrt %27 : vector<8x1xf32>
    %29 = vector.broadcast %28 : vector<8x1xf32> to vector<8x256xf32>
    %30 = arith.mulf %25, %29 : vector<8x256xf32>
    %cst_16 = arith.constant dense<0.000000e+00> : vector<8xf32>
    %31 = vector.multi_reduction <add>, %8, %cst_16 [1] : vector<8x128xf32> to vector<8xf32>
    %32 = vector.shape_cast %31 : vector<8xf32> to vector<8x1xf32>
    %33 = arith.mulf %8, %8 : vector<8x128xf32>
    %cst_17 = arith.constant dense<0.000000e+00> : vector<8xf32>
    %34 = vector.multi_reduction <add>, %33, %cst_17 [1] : vector<8x128xf32> to vector<8xf32>
    %35 = vector.shape_cast %34 : vector<8xf32> to vector<8x1xf32>
    %cst_18 = arith.constant 7.812500e-03 : f32
    %36 = vector.broadcast %cst_18 : f32 to vector<8x1xf32>
    %37 = arith.mulf %32, %36 : vector<8x1xf32>
    %cst_19 = arith.constant 7.812500e-03 : f32
    %38 = vector.broadcast %cst_19 : f32 to vector<8x1xf32>
    %39 = arith.mulf %35, %38 : vector<8x1xf32>
    %40 = arith.mulf %37, %37 : vector<8x1xf32>
    %41 = arith.subf %39, %40 : vector<8x1xf32>
    %cst_20 = arith.constant 0.000000e+00 : f32
    %42 = vector.broadcast %cst_20 : f32 to vector<8x1xf32>
    %43 = arith.maximumf %41, %42 : vector<8x1xf32>
    %44 = vector.broadcast %37 : vector<8x1xf32> to vector<8x128xf32>
    %45 = arith.subf %8, %44 : vector<8x128xf32>
    %cst_21 = arith.constant 9.99999974E-6 : f32
    %46 = vector.broadcast %cst_21 : f32 to vector<8x1xf32>
    %47 = arith.addf %43, %46 : vector<8x1xf32>
    %48 = math.rsqrt %47 : vector<8x1xf32>
    %49 = vector.broadcast %48 : vector<8x1xf32> to vector<8x128xf32>
    %50 = arith.mulf %45, %49 : vector<8x128xf32>
    %cst_22 = arith.constant dense<0.000000e+00> : vector<8xf32>
    %51 = vector.multi_reduction <add>, %9, %cst_22 [1] : vector<8x256xf32> to vector<8xf32>
    %52 = vector.shape_cast %51 : vector<8xf32> to vector<8x1xf32>
    %53 = arith.mulf %9, %9 : vector<8x256xf32>
    %cst_23 = arith.constant dense<0.000000e+00> : vector<8xf32>
    %54 = vector.multi_reduction <add>, %53, %cst_23 [1] : vector<8x256xf32> to vector<8xf32>
    %55 = vector.shape_cast %54 : vector<8xf32> to vector<8x1xf32>
    %cst_24 = arith.constant 3.906250e-03 : f32
    %56 = vector.broadcast %cst_24 : f32 to vector<8x1xf32>
    %57 = arith.mulf %52, %56 : vector<8x1xf32>
    %cst_25 = arith.constant 3.906250e-03 : f32
    %58 = vector.broadcast %cst_25 : f32 to vector<8x1xf32>
    %59 = arith.mulf %55, %58 : vector<8x1xf32>
    %60 = arith.mulf %57, %57 : vector<8x1xf32>
    %61 = arith.subf %59, %60 : vector<8x1xf32>
    %cst_26 = arith.constant 0.000000e+00 : f32
    %62 = vector.broadcast %cst_26 : f32 to vector<8x1xf32>
    %63 = arith.maximumf %61, %62 : vector<8x1xf32>
    %64 = vector.broadcast %57 : vector<8x1xf32> to vector<8x256xf32>
    %65 = arith.subf %9, %64 : vector<8x256xf32>
    %cst_27 = arith.constant 9.99999974E-6 : f32
    %66 = vector.broadcast %cst_27 : f32 to vector<8x1xf32>
    %67 = arith.addf %63, %66 : vector<8x1xf32>
    %68 = math.rsqrt %67 : vector<8x1xf32>
    %69 = vector.broadcast %68 : vector<8x1xf32> to vector<8x256xf32>
    %70 = arith.mulf %65, %69 : vector<8x256xf32>
    %cst_28 = arith.constant dense<0.000000e+00> : vector<8xf32>
    %71 = vector.multi_reduction <add>, %10, %cst_28 [1] : vector<8x128xf32> to vector<8xf32>
    %72 = vector.shape_cast %71 : vector<8xf32> to vector<8x1xf32>
    %73 = arith.mulf %10, %10 : vector<8x128xf32>
    %cst_29 = arith.constant dense<0.000000e+00> : vector<8xf32>
    %74 = vector.multi_reduction <add>, %73, %cst_29 [1] : vector<8x128xf32> to vector<8xf32>
    %75 = vector.shape_cast %74 : vector<8xf32> to vector<8x1xf32>
    %cst_30 = arith.constant 7.812500e-03 : f32
    %76 = vector.broadcast %cst_30 : f32 to vector<8x1xf32>
    %77 = arith.mulf %72, %76 : vector<8x1xf32>
    %cst_31 = arith.constant 7.812500e-03 : f32
    %78 = vector.broadcast %cst_31 : f32 to vector<8x1xf32>
    %79 = arith.mulf %75, %78 : vector<8x1xf32>
    %80 = arith.mulf %77, %77 : vector<8x1xf32>
    %81 = arith.subf %79, %80 : vector<8x1xf32>
    %cst_32 = arith.constant 0.000000e+00 : f32
    %82 = vector.broadcast %cst_32 : f32 to vector<8x1xf32>
    %83 = arith.maximumf %81, %82 : vector<8x1xf32>
    %84 = vector.broadcast %77 : vector<8x1xf32> to vector<8x128xf32>
    %85 = arith.subf %10, %84 : vector<8x128xf32>
    %cst_33 = arith.constant 9.99999974E-6 : f32
    %86 = vector.broadcast %cst_33 : f32 to vector<8x1xf32>
    %87 = arith.addf %83, %86 : vector<8x1xf32>
    %88 = math.rsqrt %87 : vector<8x1xf32>
    %89 = vector.broadcast %88 : vector<8x1xf32> to vector<8x128xf32>
    %90 = arith.mulf %85, %89 : vector<8x128xf32>
    %91 = arith.addf %30, %70 : vector<8x256xf32>
    %92 = vector.extract_strided_slice %91 {offsets = [0, 0], sizes = [8, 128], strides = [1, 1]} : vector<8x256xf32> to vector<8x128xf32>
    %93 = vector.extract_strided_slice %91 {offsets = [0, 128], sizes = [8, 128], strides = [1, 1]} : vector<8x256xf32> to vector<8x128xf32>
    %94 = arith.negf %93 : vector<8x128xf32>
    %95 = math.exp %94 : vector<8x128xf32>
    %cst_34 = arith.constant 1.000000e+00 : f32
    %96 = vector.broadcast %cst_34 : f32 to vector<8x128xf32>
    %97 = arith.addf %96, %95 : vector<8x128xf32>
    %98 = arith.divf %96, %97 : vector<8x128xf32>
    %99 = arith.mulf %98, %50 : vector<8x128xf32>
    %100 = arith.addf %90, %99 : vector<8x128xf32>
    %101 = math.tanh %100 : vector<8x128xf32>
    %102 = arith.negf %92 : vector<8x128xf32>
    %103 = math.exp %102 : vector<8x128xf32>
    %cst_35 = arith.constant 1.000000e+00 : f32
    %104 = vector.broadcast %cst_35 : f32 to vector<8x128xf32>
    %105 = arith.addf %104, %103 : vector<8x128xf32>
    %106 = arith.divf %104, %105 : vector<8x128xf32>
    %cst_36 = arith.constant 1.000000e+00 : f32
    %107 = vector.broadcast %cst_36 : f32 to vector<8x128xf32>
    %108 = arith.subf %107, %106 : vector<8x128xf32>
    %109 = arith.mulf %108, %0 : vector<8x128xf32>
    %110 = arith.mulf %106, %101 : vector<8x128xf32>
    %111 = arith.addf %109, %110 : vector<8x128xf32>
    %c0_37 = arith.constant 0 : index
    %c0_38 = arith.constant 0 : index
    %112 = vector.load %arg5[%c0_37, %c0_38] : memref<8x128xf32, #tpu.memory_space<vmem>>, vector<8x128xf32>
    tpu.vector_store %arg5[%c0_37, %c0_38], %111 {strides = array<i32>} : memref<8x128xf32, #tpu.memory_space<vmem>>, vector<8x128xf32>,
    return
  }
  func.func @transform_0(%arg0: i32) -> (i32, i32) {
    %c0_i32 = arith.constant 0 : i32
    %c0_i32_0 = arith.constant 0 : i32
    return %arg0, %c0_i32 : i32, i32
  }
  func.func @transform_1(%arg0: i32) -> (i32, i32) {
    %c0_i32 = arith.constant 0 : i32
    %c0_i32_0 = arith.constant 0 : i32
    return %arg0, %c0_i32 : i32, i32
  }
  func.func @transform_2(%arg0: i32) -> (i32, i32) {
    %c0_i32 = arith.constant 0 : i32
    %c0_i32_0 = arith.constant 0 : i32
    %c0_i32_1 = arith.constant 0 : i32
    return %c0_i32, %c0_i32_0 : i32, i32
  }
  func.func @transform_3(%arg0: i32) -> (i32, i32) {
    %c0_i32 = arith.constant 0 : i32
    %c0_i32_0 = arith.constant 0 : i32
    %c0_i32_1 = arith.constant 0 : i32
    return %c0_i32, %c0_i32_0 : i32, i32
  }
  func.func @transform_4(%arg0: i32) -> (i32, i32) {
    %c0_i32 = arith.constant 0 : i32
    %c0_i32_0 = arith.constant 0 : i32
    return %arg0, %c0_i32 : i32, i32
  }
}

</mosaic_0001>

<bundles_post_ra>
// kernel: tpu_custom_call.1
= control target key start
LH: loop header
LB: loop body
LE: loop exit
PB: predicated region body
PF: predicated region fallthrough
CT: control target
= control target key end

     0   :  { %9 = vsyncpa [#allocation3], 0  ;;  %s938_s0 = inlined_call_operand.vmem [shape: f32[8,64], index: 0, kind: input, shape index: {}]   ;;  %s939_s1 = inlined_call_operand.hbm [shape: f32[8,128], index: 1, kind: input, shape index: {}, may-alias: {1,4}]   ;;  %s940_s2 = inlined_call_operand.hbm [shape: f32[64,384], index: 2, kind: input, shape index: {}]   ;;  %s941_s3 = inlined_call_operand.hbm [shape: f32[128,384], index: 3, kind: input, shape index: {}]   ;;  %s942_s4 = inlined_call_operand.hbm [shape: f32[8,128], index: 4, kind: output, shape index: {}, may-alias: {1,4}]  }
   0x1   :  { %10 = vsyncpa [#allocation6], 0 }
   0x2   :  { %11 = vsyncpa [#allocation4], 0  ;;  %s810_s15 = smov [#allocation5]   ;;  %s716_s19 = scalar_lea.hbm %s940_s2, 3072 }
   0x3   :  { %s29_s16 = sshll.u32 %s810_s15, 4  ;;  %p717_p0 = scmp.ne.s32.totalorder %s940_s2, %s716_s19  ;;  %s30_s16 = int_to_ptr.vmem [resolvable:$true] %s29_s16 }
   0x4   :  { %p720_p1 = scmp.lt.u32.totalorder %s716_s19, %s940_s2 }
   0x6   :  { %p722_p2 = pnand %p720_p1, %p717_p0 }
   0x8   :  { %725 = shalt.err (!%p722_p2)
}
   0x9   :  { %s726_s24 = scalar_lea.vmem %s30_s16, 3072  ;;  %p731_p4 = scmp.lt.s32.totalorder %s30_s16, %s30_s16 }
   0xa   :  { %p727_p3 = scmp.ne.s32.totalorder %s30_s16, %s726_s24  ;;  %p732_p5 = scmp.lt.s32.totalorder %s726_s24, %s726_s24 }
   0xc   :  { %p733_p6 = por %p732_p5, %p731_p4 }
   0xe   :  { %p734_p7 = pnand %p733_p6, %p727_p3 }
  0x10   :  { %737 = shalt.err (!%p734_p7)
}
  0x11   :  { %s811_s25 = smov 384   ;;  %s812_s26 = smov 24  }
  0x12   :  { %35 = dma.hbm_to_vmem [thread:$0]  %s940_s2, 3072, %s30_s16, [#allocation6], %s811_s25, %s811_s25, %s812_s26  }
  0x13   :  { %s813_s29 = smov [#allocation2]   ;;  %s814_s5 = smov [#allocation7]  }
  0x14   :  { %s20_s30 = sshll.u32 %s813_s29, 4  ;;  %s41_s6 = sshll.u32 %s814_s5, 4  ;;  %s21_s30 = int_to_ptr.vmem [resolvable:$true] %s20_s30  ;;  %s42_s6 = int_to_ptr.vmem [resolvable:$true] %s41_s6 }
  0x15   :  { %s738_s9 = scalar_lea.hbm %s939_s1, 128 }
  0x16   :  { %p739_p8 = scmp.ne.s32.totalorder %s939_s1, %s738_s9  ;;  %p742_p9 = scmp.lt.u32.totalorder %s738_s9, %s939_s1 }
  0x18   :  { %p744_p10 = pnand %p742_p9, %p739_p8 }
  0x1a   :  { %747 = shalt.err (!%p744_p10)
}
  0x1b   :  { %s748_s2 = scalar_lea.vmem %s21_s30, 128  ;;  %p753_p12 = scmp.lt.s32.totalorder %s21_s30, %s21_s30 }
  0x1c   :  { %p749_p11 = scmp.ne.s32.totalorder %s21_s30, %s748_s2  ;;  %p754_p13 = scmp.lt.s32.totalorder %s748_s2, %s748_s2 }
  0x1e   :  { %p755_p0 = por %p754_p13, %p753_p12 }
  0x20   :  { %p756_p1 = pnand %p755_p0, %p749_p11 }
  0x22   :  { %759 = shalt.err (!%p756_p1)
}
  0x23   :  { %23 = dma.hbm_to_vmem [thread:$0]  %s939_s1, 128, %s21_s30, [#allocation3]  }
  0x24   :  { %s760_s18 = scalar_lea.hbm %s941_s3, 6144 }
  0x25   :  { %p761_p2 = scmp.ne.s32.totalorder %s941_s3, %s760_s18  ;;  %p764_p3 = scmp.lt.u32.totalorder %s760_s18, %s941_s3 }
  0x27   :  { %p766_p4 = pnand %p764_p3, %p761_p2 }
  0x29   :  { %769 = shalt.err (!%p766_p4)
}
  0x2a   :  { %s770_s23 = scalar_lea.vmem %s42_s6, 6144  ;;  %p775_p6 = scmp.lt.s32.totalorder %s42_s6, %s42_s6 }
  0x2b   :  { %p771_p5 = scmp.ne.s32.totalorder %s42_s6, %s770_s23  ;;  %p776_p7 = scmp.lt.s32.totalorder %s770_s23, %s770_s23 }
  0x2d   :  { %p777_p8 = por %p776_p7, %p775_p6 }
  0x2f   :  { %p778_p9 = pnand %p777_p8, %p771_p5 }
  0x31   :  { %781 = shalt.err (!%p778_p9)
}
  0x32   :  { %47 = dma.hbm_to_vmem [thread:$0]  %s941_s3, 6144, %s42_s6, [#allocation6], %s811_s25, %s811_s25, %s812_s26  }
  0x33   :  { %804 = dma.done.wait [#allocation3], 128  }
  0x34   :  { %805 = vsyncadd [#allocation3], 4294967168 }
  0x35   :  { %806 = dma.done.wait [#allocation6], 9216  }
  0x36   :  { %807 = vsyncadd [#allocation6], 4294958080  ;;  %v815_v0 = vmov 0.0|0.0   ;;  %v816_v1 = vmov 0.0   ;;  %vm817_vm0 = vmmov 0   ;;  %v60_v2 = vld [vmem:[#allocation5 + $0x8] sm:$0xff] }
  0x37   :  { %621 = vmatprep.subr.bf16.mxu1 %v815_v0  ;;  %151 = vmatprep.mubr.f32.mxu0 %v816_v1  ;;  %v63_v3 = vld [vmem:[#allocation5 + $0x20] sm:$0xff]  ;;  %v62_v6 = vld [vmem:[#allocation5 + $0x18] sm:$0xff]  ;;  %v69_v8 = vld [vmem:[#allocation5 + $0x50] sm:$0xff]  ;;  %vm83_vm1 = vcmask 523264  }
  0x38   :  { %567 = vmatprep.mubr.msk.f32.mxu1 %vm817_vm0, %v816_v1  ;;  %v59_v4 = vld [vmem:[#allocation5] sm:$0xff]  ;;  %v605_v5 = vpack.c.bf16 %v63_v3, %v60_v2  ;;  %v66_v7 = vld [vmem:[#allocation5 + $0x38] sm:$0xff]  ;;  %v65_v11 = vld [vmem:[#allocation5 + $0x30] sm:$0xff] }
  0x39   :  { %v607_v9 = vpack.c.bf16 %v62_v6, %v59_v4  ;;  %v609_v10 = vpack.c.bf16 %v69_v8, %v66_v7  ;;  %v68_v12 = vld [vmem:[#allocation5 + $0x48] sm:$0xff]  ;;  %v75_v14 = vld [vmem:[#allocation5 + $0x80] sm:$0xff]  ;;  %v61_v17 = vld [vmem:[#allocation5 + $0x10] sm:$0xff] }
  0x3a   :  { %v72_v13 = vld [vmem:[#allocation5 + $0x68] sm:$0xff]  ;;  %606 = vmatprep.subr.bf16.mxu0 %v605_v5  ;;  %v611_v15 = vpack.c.bf16 %v68_v12, %v65_v11  ;;  %v71_v16 = vld [vmem:[#allocation5 + $0x60] sm:$0xff]  ;;  %v74_v19 = vld [vmem:[#allocation5 + $0x78] sm:$0xff] }
  0x3b   :  { %608 = vmatpush1.bf16.msra.mxu0 %v607_v9  ;;  %v613_v18 = vpack.c.bf16 %v75_v14, %v72_v13  ;;  %v78_v20 = vld [vmem:[#allocation5 + $0x98] sm:$0xff]  ;;  %v64_v21 = vld [vmem:[#allocation5 + $0x28] sm:$0xff]  ;;  %v81_v22 = vld [vmem:[#allocation5 + $0xb0] sm:$0xff]  ;;  %v615_v26 = vpack.c.bf16 %v74_v19, %v71_v16 }
  0x3c   :  { %610 = vmatprep.subr.bf16.mxu0 %v609_v10  ;;  %v622_v23 = vpack.c.bf16 %v64_v21, %v61_v17  ;;  %v67_v24 = vld [vmem:[#allocation5 + $0x40] sm:$0xff]  ;;  %v70_v25 = vld [vmem:[#allocation5 + $0x58] sm:$0xff]  ;;  %v77_v27 = vld [vmem:[#allocation5 + $0x90] sm:$0xff]  ;;  %v617_v29 = vpack.c.bf16 %v81_v22, %v78_v20 }
  0x3d   :  { %v625_v28 = vpack.c.bf16 %v70_v25, %v67_v24  ;;  %v80_v30 = vld [vmem:[#allocation5 + $0xa8] sm:$0xff]  ;;  %v73_v31 = vld [vmem:[#allocation5 + $0x70] sm:$0xff]  ;;  %v232_v34 = vld [vmem:[#allocation7 + $0x20] sm:$0xff] }
  0x3e   :  { %623 = vmatpush3.bf16.msra.mxu1 %v622_v23  ;;  %v76_v32 = vld [vmem:[#allocation5 + $0x88] sm:$0xff]  ;;  %v619_v35 = vpack.c.bf16 %v80_v30, %v77_v27  ;;  %v228_v36 = vld [vmem:[#allocation7] sm:$0xff]  ;;  %v231_v39 = vld [vmem:[#allocation7 + $0x18] sm:$0xff] }
  0x3f   :  { %612 = vmatpush1.bf16.msra.mxu0 %v611_v15  ;;  %624 = vmatprep.subr.bf16.mxu1 %v815_v0  ;;  %v229_v33 = vld [vmem:[#allocation7 + $0x8] sm:$0xff]  ;;  %v628_v37 = vpack.c.bf16 %v76_v32, %v73_v31  ;;  %v79_v40 = vld [vmem:[#allocation5 + $0xa0] sm:$0xff]  ;;  %v82_v41 = vld [vmem:[#allocation5 + $0xb8] sm:$0xff]  ;;  %v635_v45 = vpack.c.bf16 %v231_v39, %v228_v36 }
  0x40   :  { %614 = vmatprep.subr.bf16.mxu0 %v613_v18  ;;  %v633_v38 = vpack.c.bf16 %v232_v34, %v229_v33  ;;  %v235_v42 = vld [vmem:[#allocation7 + $0x38] sm:$0xff]  ;;  %v238_v43 = vld [vmem:[#allocation7 + $0x50] sm:$0xff]  ;;  %v631_v47 = vpack.c.bf16 %v82_v41, %v79_v40  ;;  %v237_v49 = vld [vmem:[#allocation7 + $0x48] sm:$0xff] }
  0x41   :  { %v58_v44 = vld [vmem:[%s938_s0] sm:$0xff]  ;;  %v234_v46 = vld [vmem:[#allocation7 + $0x30] sm:$0xff]  ;;  %v637_v48 = vpack.c.bf16 %v238_v43, %v235_v42  ;;  %v233_v51 = vld [vmem:[#allocation7 + $0x28] sm:$0xff]  ;;  %s818_s0 = smov [#allocation8]  }
  0x42   :  { %626 = vmatpush3.bf16.msra.mxu1 %v625_v28  ;;  %v230_v50 = vld [vmem:[#allocation7 + $0x10] sm:$0xff]  ;;  %v241_v52 = vld [vmem:[#allocation7 + $0x68] sm:$0xff]  ;;  %v244_v53 = vld [vmem:[#allocation7 + $0x80] sm:$0xff]  ;;  %v639_v54 = vpack.c.bf16 %v237_v49, %v234_v46  ;;  %s511_s26 = sshll.u32 %s818_s0, 4  ;;  %s512_s26 = int_to_ptr.vmem [resolvable:$true] %s511_s26 }
  0x43   :  { %616 = vmatpush1.bf16.msra.mxu0 %v615_v26  ;;  %627 = vmatprep.subr.bf16.mxu1 %v815_v0  ;;  %v240_v55 = vld [vmem:[#allocation7 + $0x60] sm:$0xff]  ;;  %v666_v56 = vpack.c.bf16 %v233_v51, %v230_v50  ;;  %v641_v57 = vpack.c.bf16 %v244_v53, %v241_v52  ;;  %v243_v58 = vld [vmem:[#allocation7 + $0x78] sm:$0xff]  ;;  %v250_v62 = vld [vmem:[#allocation7 + $0xb0] sm:$0xff]  ;;  %s782_s27 = scalar_lea.vmem %s512_s26, 128  ;;  %p787_p11 = scmp.lt.s32.totalorder %s512_s26, %s512_s26 }
  0x44   :  { %618 = vmatprep.subr.bf16.mxu0 %v617_v29  ;;  %v236_v59 = vld [vmem:[#allocation7 + $0x40] sm:$0xff]  ;;  %v239_v60 = vld [vmem:[#allocation7 + $0x58] sm:$0xff]  ;;  %v643_v63 = vpack.c.bf16 %v243_v58, %v240_v55  ;;  %v246_v2 = vld [vmem:[#allocation7 + $0x90] sm:$0xff]  ;;  %p783_p10 = scmp.ne.s32.totalorder %s512_s26, %s782_s27  ;;  %p788_p12 = scmp.lt.s32.totalorder %s782_s27, %s782_s27 }
  0x45   :  { %v247_v61 = vld [vmem:[#allocation7 + $0x98] sm:$0xff]  ;;  %v669_v3 = vpack.c.bf16 %v239_v60, %v236_v59  ;;  %v249_v5 = vld [vmem:[#allocation7 + $0xa8] sm:$0xff]  ;;  %v242_v6 = vld [vmem:[#allocation7 + $0x70] sm:$0xff] }
  0x46   :  { %629 = vmatpush3.bf16.msra.mxu1 %v628_v37  ;;  %v645_v4 = vpack.c.bf16 %v250_v62, %v247_v61  ;;  %v245_v7 = vld [vmem:[#allocation7 + $0x88] sm:$0xff]  ;;  %v256_v9 = vld [vmem:[#allocation7 + $0xe0] sm:$0xff]  ;;  %v647_v10 = vpack.c.bf16 %v249_v5, %v246_v2  ;;  %v255_v14 = vld [vmem:[#allocation7 + $0xd8] sm:$0xff]  ;;  %p789_p13 = por %p788_p12, %p787_p11 }
  0x47   :  { %620 = vmatpush1.bf16.msra.mxu0 %v619_v35  ;;  %630 = vmatprep.subr.bf16.mxu1 %v815_v0  ;;  %v253_v8 = vld [vmem:[#allocation7 + $0xc8] sm:$0xff]  ;;  %v252_v11 = vld [vmem:[#allocation7 + $0xc0] sm:$0xff]  ;;  %v672_v12 = vpack.c.bf16 %v245_v7, %v242_v6  ;;  %v251_v16 = vld [vmem:[#allocation7 + $0xb8] sm:$0xff] }
  0x48   :  { %634 = vmatprep.subr.bf16.mxu0 %v633_v38  ;;  %v649_v13 = vpack.c.bf16 %v256_v9, %v253_v8  ;;  %v248_v15 = vld [vmem:[#allocation7 + $0xa0] sm:$0xff]  ;;  %v259_v17 = vld [vmem:[#allocation7 + $0xf8] sm:$0xff]  ;;  %v262_v18 = vld [vmem:[#allocation7 + $0x110] sm:$0xff]  ;;  %v651_v19 = vpack.c.bf16 %v255_v14, %v252_v11  ;;  %p790_p0 = pnand %p789_p13, %p783_p10 }
  0x49   :  { %v258_v20 = vld [vmem:[#allocation7 + $0xf0] sm:$0xff]  ;;  %v675_v21 = vpack.c.bf16 %v251_v16, %v248_v15  ;;  %v261_v22 = vld [vmem:[#allocation7 + $0x108] sm:$0xff]  ;;  %v268_v26 = vld [vmem:[#allocation7 + $0x140] sm:$0xff] }
  0x4a   :  { %521 = vmatmul.mubr.msk.f32.vlgmr.msra.gmra.mrb[0].mxu0 %vm83_vm1, %v58_v44  ;;  %632 = vmatpush3.bf16.msra.mxu1 %v631_v47  ;;  %v254_v23 = vld [vmem:[#allocation7 + $0xd0] sm:$0xff]  ;;  %v257_v24 = vld [vmem:[#allocation7 + $0xe8] sm:$0xff]  ;;  %v655_v27 = vpack.c.bf16 %v261_v22, %v258_v20  ;;  %v264_v28 = vld [vmem:[#allocation7 + $0x120] sm:$0xff] }
  0x4b   :  { %636 = vmatpush1.bf16.msra.mxu0 %v635_v45  ;;  %665 = vmatprep.subr.bf16.mxu1 %v815_v0  ;;  %v265_v25 = vld [vmem:[#allocation7 + $0x128] sm:$0xff]  ;;  %v678_v29 = vpack.c.bf16 %v257_v24, %v254_v23  ;;  %v267_v31 = vld [vmem:[#allocation7 + $0x138] sm:$0xff]  ;;  %v260_v32 = vld [vmem:[#allocation7 + $0x100] sm:$0xff] }
  0x4c   :  { %638 = vmatprep.subr.bf16.mxu0 %v637_v48  ;;  %340 = vmatprep.mubr.f32.mxu0 %v816_v1  ;;  %v657_v30 = vpack.c.bf16 %v268_v26, %v265_v25  ;;  %v263_v33 = vld [vmem:[#allocation7 + $0x118] sm:$0xff]  ;;  %v274_v35 = vld [vmem:[#allocation7 + $0x170] sm:$0xff]  ;;  %v659_v36 = vpack.c.bf16 %v267_v31, %v264_v28  ;;  %v273_v40 = vld [vmem:[#allocation7 + $0x168] sm:$0xff] }
  0x4d   :  { %568 = vmatmul.mubr.msk.f32.vlgmr.msra.gmra.mrb[0].mxu1 %vm83_vm1, %v58_v44  ;;  %v271_v34 = vld [vmem:[#allocation7 + $0x158] sm:$0xff]  ;;  %v270_v37 = vld [vmem:[#allocation7 + $0x150] sm:$0xff]  ;;  %v681_v38 = vpack.c.bf16 %v263_v33, %v260_v32  ;;  %v269_v42 = vld [vmem:[#allocation7 + $0x148] sm:$0xff] }
  0x4e   :  { %667 = vmatpush3.bf16.msra.mxu1 %v666_v56  ;;  %602 = vmatprep.mubr.msk.f32.mxu1 %vm817_vm0, %v816_v1  ;;  %v653_v1 = vpack.c.bf16 %v262_v18, %v259_v17  ;;  %v661_v39 = vpack.c.bf16 %v274_v35, %v271_v34  ;;  %v266_v41 = vld [vmem:[#allocation7 + $0x130] sm:$0xff]  ;;  %v663_v43 = vpack.c.bf16 %v273_v40, %v270_v37  ;;  %v272_v45 = vld [vmem:[#allocation7 + $0x160] sm:$0xff]  ;;  %v275_v46 = vld [vmem:[#allocation7 + $0x178] sm:$0xff] }
  0x4f   :  { %640 = vmatpush1.bf16.msra.mxu0 %v639_v54  ;;  %668 = vmatprep.subr.bf16.mxu1 %v815_v0  ;;  %v684_v44 = vpack.c.bf16 %v269_v42, %v266_v41  ;;  %v908_v47 = vld [vmem:[#allocation2] sm:$0xff]  ;;  %v687_v48 = vpack.c.bf16 %v275_v46, %v272_v45 }
  0x50   :  { %642 = vmatprep.subr.bf16.mxu0 %v641_v57 }
  0x52   :  { %670 = vmatpush3.bf16.msra.mxu1 %v669_v3 }
  0x53   :  { %644 = vmatpush1.bf16.msra.mxu0 %v643_v63  ;;  %671 = vmatprep.subr.bf16.mxu1 %v815_v0 }
  0x54   :  { %646 = vmatprep.subr.bf16.mxu0 %v645_v4 }
  0x56   :  { %673 = vmatpush3.bf16.msra.mxu1 %v672_v12 }
  0x57   :  { %648 = vmatpush1.bf16.msra.mxu0 %v647_v10  ;;  %674 = vmatprep.subr.bf16.mxu1 %v815_v0 }
  0x58   :  { %650 = vmatprep.subr.bf16.mxu0 %v649_v13 }
  0x5a   :  { %676 = vmatpush3.bf16.msra.mxu1 %v675_v21 }
  0x5b   :  { %652 = vmatpush1.bf16.msra.mxu0 %v651_v19  ;;  %677 = vmatprep.subr.bf16.mxu1 %v815_v0 }
  0x5c   :  { %654 = vmatprep.subr.bf16.mxu0 %v653_v1 }
  0x5e   :  { %679 = vmatpush3.bf16.msra.mxu1 %v678_v29 }
  0x5f   :  { %656 = vmatpush1.bf16.msra.mxu0 %v655_v27  ;;  %680 = vmatprep.subr.bf16.mxu1 %v815_v0 }
  0x60   :  { %658 = vmatprep.subr.bf16.mxu0 %v657_v30 }
  0x62   :  { %682 = vmatpush3.bf16.msra.mxu1 %v681_v38 }
  0x63   :  { %660 = vmatpush1.bf16.msra.mxu0 %v659_v36  ;;  %683 = vmatprep.subr.bf16.mxu1 %v815_v0 }
  0x64   :  { %662 = vmatprep.subr.bf16.mxu0 %v661_v39 }
  0x66   :  { %685 = vmatpush3.bf16.msra.mxu1 %v684_v44 }
  0x67   :  { %664 = vmatpush1.bf16.msra.mxu0 %v663_v43  ;;  %686 = vmatprep.subr.bf16.mxu1 %v815_v0 }
  0x6a   :  { %341 = vmatmul.mubr.f32.vlgmr.msra.gmra.mrb[2].mxu0 %v908_v47  ;;  %688 = vmatpush3.bf16.msra.mxu1 %v687_v48 }
  0x6d   :  { %603 = vmatmul.mubr.f32.vlgmr.msra.gmra.mrb[2].mxu1 %v908_v47 }
 0x11d   :  { %v153_v49 = vpop.f32.mrb[0].mxu0 }
 0x11e   :  { %v155_v50 = vpop.f32.mrb[1].mxu0  ;;  %v453_v51 = vmul.f32 %v153_v49, %v153_v49 }
 0x11f   :  { %v450_v52 = vadd.f32 %v155_v50, %v153_v49  ;;  %v454_v53 = vmul.f32 %v155_v50, %v155_v50 }
 0x120   :  { %v913_v54 = vpop.f32.mrb[0].mxu1 }
 0x121   :  { %v455_v55 = vadd.f32 %v454_v53, %v453_v51  ;;  %v569_v56 = vpop.f32.mrb[1].mxu1  ;;  %v471_v3 = vmul.f32 %v913_v54, %v913_v54 }
 0x13d   :  { %v342_v57 = vpop.f32.mrb[2].mxu0 }
 0x13e   :  { %v344_v58 = vpop.f32.mrb[3].mxu0  ;;  %v420_v59 = vmul.f32 %v342_v57, %v342_v57 }
 0x13f   :  { %v421_v60 = vmul.f32 %v344_v58, %v344_v58  ;;  %v417_v61 = vadd.f32 %v344_v58, %v342_v57 }
 0x140   :  { %v915_v62 = vpop.f32.mrb[2].mxu1 }
 0x141   :  { %418 = vadd.xlane.f32.xlu0 %v417_v61  ;;  %v422_v0 = vadd.f32 %v421_v60, %v420_v59  ;;  %v604_v63 = vpop.f32.mrb[3].mxu1  ;;  %v438_v2 = vmul.f32 %v915_v62, %v915_v62 }
 0x143   :  { %423 = vadd.xlane.f32.xlu1 %v422_v0 }
 0x145   :  { %451 = vadd.xlane.f32.xlu0 %v450_v52 }
 0x147   :  { %456 = vadd.xlane.f32.xlu1 %v455_v55 }
 0x149   :  { %436 = vadd.xlane.f32.xlu0 %v915_v62 }
 0x14b   :  { %439 = vadd.xlane.f32.xlu1 %v438_v2 }
 0x14d   :  { %469 = vadd.xlane.f32.xlu0 %v913_v54 }
 0x14f   :  { %472 = vadd.xlane.f32.xlu1 %v471_v3 }
 0x1ce   :  { %v419_v4 = vpop.xlane.xlu0 %418 }
 0x1cf   :  { %v425_v5 = vmul.f32 0.00390625, %v419_v4 }
 0x1d0   :  { %v424_v6 = vpop.xlane.xlu1 %423 }
 0x1d1   :  { %v426_v7 = vmul.f32 0.00390625, %v424_v6  ;;  %v427_v8 = vmul.f32 %v425_v5, %v425_v5  ;;  %v430_v25 = vsub.f32 %v342_v57, %v425_v5  ;;  %v431_v26 = vsub.f32 %v344_v58, %v425_v5 }
 0x1d2   :  { %v452_v9 = vpop.xlane.xlu0 %451 }
 0x1d3   :  { %v428_v10 = vsub.f32 %v426_v7, %v427_v8  ;;  %v458_v11 = vmul.f32 0.00390625, %v452_v9 }
 0x1d4   :  { %v457_v12 = vpop.xlane.xlu1 %456 }
 0x1d5   :  { %v429_v13 = vmax.f32 %v428_v10, 0.0  ;;  %v459_v14 = vmul.f32 0.00390625, %v457_v12  ;;  %v460_v15 = vmul.f32 %v458_v11, %v458_v11  ;;  %v463_v27 = vsub.f32 %v153_v49, %v458_v11 }
 0x1d6   :  { %v437_v20 = vpop.xlane.xlu0 %436  ;;  %v464_v28 = vsub.f32 %v155_v50, %v458_v11 }
 0x1d7   :  { %v432_v16 = vadd.f32 1e-05, %v429_v13  ;;  %v461_v17 = vsub.f32 %v459_v14, %v460_v15  ;;  %v441_v22 = vmul.f32 0.0078125, %v437_v20 }
 0x1d8   :  { %v440_v21 = vpop.xlane.xlu1 %439 }
 0x1d9   :  { %v462_v18 = vmax.f32 %v461_v17, 0.0  ;;  %698 = vrsqrt.f32 %v432_v16  ;;  %v443_v31 = vmul.f32 %v441_v22, %v441_v22  ;;  %v442_v32 = vmul.f32 0.0078125, %v440_v21 }
 0x1da   :  { %v470_v1 = vpop.xlane.xlu0 %469  ;;  %v446_v56 = vsub.f32 %v915_v62, %v441_v22 }
 0x1db   :  { %v465_v19 = vadd.f32 1e-05, %v462_v18  ;;  %v474_v24 = vmul.f32 0.0078125, %v470_v1  ;;  %v444_v41 = vsub.f32 %v442_v32, %v443_v31 }
 0x1dc   :  { %v473_v29 = vpop.xlane.xlu1 %472 }
 0x1dd   :  { %700 = vrsqrt.f32 %v465_v19  ;;  %v476_v37 = vmul.f32 %v474_v24, %v474_v24  ;;  %v475_v38 = vmul.f32 0.0078125, %v473_v29  ;;  %v445_v45 = vmax.f32 %v444_v41, 0.0 }
 0x1de   :  { %v479_v59 = vsub.f32 %v913_v54, %v474_v24 }
 0x1df   :  { %v477_v43 = vsub.f32 %v475_v38, %v476_v37  ;;  %v447_v48 = vadd.f32 1e-05, %v445_v45 }
 0x1e1   :  { %v478_v46 = vmax.f32 %v477_v43, 0.0 }
 0x1e3   :  { %v699_v23 = vpop.eup %698  ;;  %v480_v49 = vadd.f32 1e-05, %v478_v46 }
 0x1e4   :  { %v434_v33 = vmul.f32 %v699_v23, %v430_v25  ;;  %v435_v34 = vmul.f32 %v699_v23, %v431_v26 }
 0x1e7   :  { %v701_v30 = vpop.eup %700 }
 0x1e8   :  { %v467_v35 = vmul.f32 %v701_v30, %v463_v27  ;;  %v468_v36 = vmul.f32 %v701_v30, %v464_v28 }
 0x1ea   :  { %v483_v39 = vadd.f32 %v467_v35, %v434_v33  ;;  %v484_v40 = vadd.f32 %v468_v36, %v435_v34 }
 0x1ec   :  { %v523_v42 = vmul.f32 -1.442695, %v484_v40  ;;  %v524_v44 = vmul.f32 -1.442695, %v483_v39 }
 0x1ee   :  { %702 = vpow2.f32 %v523_v42 }
 0x1ef   :  { %704 = vpow2.f32 %v524_v44 }
 0x1f0   :  { %706 = vrsqrt.f32 %v447_v48 }
 0x1f1   :  { %708 = vrsqrt.f32 %v480_v49 }
 0x1f8   :  { %v703_v50 = vpop.eup %702 }
 0x1f9   :  { %v488_v51 = vadd.f32 1.0, %v703_v50  ;;  %v705_v52 = vpop.eup %704 }
 0x1fa   :  { %v497_v53 = vadd.f32 1.0, %v705_v52  ;;  %v707_v55 = vpop.eup %706 }
 0x1fb   :  { %710 = vrcp.f32 %v488_v51  ;;  %v709_v57 = vpop.eup %708  ;;  %v449_v58 = vmul.f32 %v707_v55, %v446_v56 }
 0x1fc   :  { %712 = vrcp.f32 %v497_v53  ;;  %v482_v0 = vmul.f32 %v709_v57, %v479_v59 }
 0x205   :  { %v711_v60 = vpop.eup %710 }
 0x206   :  { %v491_v61 = vmul.f32 %v711_v60, %v449_v58  ;;  %v713_v2 = vpop.eup %712 }
 0x207   :  { %v500_v3 = vsub.f32 1.0, %v713_v2 }
 0x208   :  { %v492_v63 = vadd.f32 %v491_v61, %v482_v0 }
 0x209   :  { %v501_v5 = vmul.f32 %v500_v3, %v908_v47 }
 0x20a   :  { %714 = vtanh.f32 %v492_v63 }
 0x214   :  { %v715_v4 = vpop.eup %714 }
 0x215   :  { %v502_v6 = vmul.f32 %v715_v4, %v713_v2 }
 0x217   :  { %v503_v7 = vadd.f32 %v502_v6, %v501_v5 }
 0x219   :  { %504 = vst [vmem:[#allocation8] sm:$0xff] %v503_v7 }
 0x21a   :  { %793 = shalt.err (!%p790_p0)
}
 0x21b   :  { %s794_s30 = scalar_lea.hbm %s942_s4, 128 }
 0x21c   :  { %p795_p1 = scmp.ne.s32.totalorder %s942_s4, %s794_s30  ;;  %p798_p2 = scmp.lt.u32.totalorder %s794_s30, %s942_s4 }
 0x21e   :  { %p800_p3 = pnand %p798_p2, %p795_p1 }
 0x220   :  { %803 = shalt.err (!%p800_p3)
}
 0x221   :  { %514 = dma.vmem_to_hbm [thread:$0]  %s512_s26, 128, %s942_s4, [#allocation4]  }
 0x222   :  { %808 = dma.done.wait [#allocation4], 128  }
 0x223   :  { %809 = vsyncadd [#allocation4], 4294967168 }
 0x224   :  { %518 = vsyncpa [#allocation3], 1 }
 0x225   :  { %519 = vsyncpa [#allocation6], 1 }
 0x226   :  { %520 = vsyncpa [#allocation4], 1 }

</bundles_post_ra>
